<compile_context>
chip_gen: v6e
topology: v6e:2x2x1
jax: 0.10.0
libtpu: 0.0.40
codegen_flags: <defaults>
</compile_context>

<pallas_src>
import functools

import jax
import jax.numpy as jnp
from jax import lax
from jax.experimental import pallas as pl
from jax.experimental.pallas import tpu as pltpu

CITY_CLS_NUM_LIST = [
    2036071935, 336037810, 1259785820, 36211593, 48485660, 67767822, 11509768,
    30521277, 878719065, 63964556, 221461664, 67201112, 7444743, 386482742,
    14774826, 12995272, 12863901, 5445705, 22848390,
]
GTAV_CLS_NUM_LIST = [
    8237943280, 1931023594, 3694301950, 474412231, 196878425, 284853377,
    31996530, 23590587, 1741486285, 569004561, 3693099178, 84462036,
    7145664, 610411201, 286816852, 115366961, 28849798, 7545186, 1567045,
]
SYN_CLS_NUM_LIST = [
    1185290631, 1238150643, 1877694687, 17349953, 17092879, 66859757, 2471516,
    6790000, 654951069, 1e-05, 438904043, 270470344, 29551148, 260325897,
    1e-05, 95771398, 1e-05, 13280308, 13896624,
]

NUM_CLASSES = len(GTAV_CLS_NUM_LIST)   # 19


def _fold_lane_chunks(v):
    """Sum the 128-wide lane chunks of a (1, L) vector into one (1, 128) row.

    All slices are 128-lane-aligned static vreg selects; 4 interleaved partial
    accumulators keep the VALU dependency chain short. No XLU work.
    """
    n_chunks = v.shape[1] // 128
    parts = []
    for p in range(min(4, n_chunks)):
        acc = v[:, p * 128:(p + 1) * 128]
        for k in range(p + 4, n_chunks, 4):
            acc = acc + v[:, k * 128:(k + 1) * 128]
        parts.append(acc)
    out = parts[0]
    for p in parts[1:]:
        out = out + p
    return out


def _bsce_kernel(x_ref, t_ref, logw_ref, sum_ref, cnt_ref, *,
                 ignore_index, hw, tile_hw):
    """Balanced-softmax CE partial for one independent (batch, pixel-tile) block.

    x_ref    : (C, T)  logits   — classes on sublanes, pixels on lanes
    t_ref    : (1, T)  int32    — target class ids (lane-dense)
    logw_ref : (C, 1)  f32      — log(class_counts)
    sum_ref  : (1, 128) f32     — folded per-tile loss partial
    cnt_ref  : (1, 128) f32     — folded per-tile valid-pixel count partial
    """
    j = pl.program_id(1)

    # balanced-softmax shift: x + log(n_c)   (bf16 inputs upcast to f32 here)
    x = x_ref[...].astype(jnp.float32) + logw_ref[...]              # (C, T)

    # logsumexp over the class (sublane) axis
    m = jnp.max(x, axis=0, keepdims=True)                            # (1, T)
    e = jnp.exp(x - m)                                               # (C, T)
    lse = m + jnp.log(jnp.sum(e, axis=0, keepdims=True))             # (1, T)

    # logit at the target class: (C,1) class-id column vs (1,T) targets.
    # (avoids materializing a full (C,T) iota; single compare, used once)
    tgt = t_ref[...]                                                 # (1, T)
    cls_col = lax.broadcasted_iota(jnp.int32, (x.shape[0], 1), 0)    # (C, 1)
    onehot = cls_col == tgt                                          # (C, T)
    picked = jnp.sum(jnp.where(onehot, x, 0.0), axis=0, keepdims=True)

    # validity: not ignored AND inside the real (unpadded) pixel range.
    # Out-of-range lanes of a ragged boundary block hold unspecified data;
    # jnp.where keeps any inf/NaN they produce out of the accumulations.
    lane = lax.broadcasted_iota(jnp.int32, tgt.shape, 1)             # (1, T)
    in_bounds = (j * tile_hw + lane) < hw
    valid = jnp.logical_and(tgt != ignore_index, in_bounds)          # (1, T)

    loss = jnp.where(valid, lse - picked, 0.0)                       # (1, T)
    cnt = valid.astype(jnp.float32)                                  # (1, T)

    # fold per-lane vectors into one lane-group -> tiny HBM writeback,
    # no resident accumulator, both grid axes stay "parallel".
    sum_ref[...] = _fold_lane_chunks(loss)
    cnt_ref[...] = _fold_lane_chunks(cnt)


def balanced_softmax_ce(pred_nchw, targets, cls_num_list=GTAV_CLS_NUM_LIST,
                        ignore_index=-100, tile_hw=32768):
    """pred_nchw: (N, C, H, W) f32/bf16; targets: (N, H, W) int. Scalar mean loss."""
    n, c, h, w = pred_nchw.shape
    assert c == len(cls_num_list)
    hw = h * w

    # Lane-axis tile: multiple of 128, clamped for small spatial sizes.
    tile_hw = min(tile_hw, pl.cdiv(hw, 128) * 128)
    n_tiles = pl.cdiv(hw, tile_hw)

    # --- plain-JAX glue: free reshapes only (no transpose, no padding) ---
    x = pred_nchw.reshape(n, c, hw)                       # (N, C, HW)
    t = targets.reshape(n, 1, hw).astype(jnp.int32)       # (N, 1, HW)
    logw = jnp.log(jnp.asarray(cls_num_list, dtype=jnp.float32)).reshape(c, 1)

    kernel = functools.partial(_bsce_kernel, ignore_index=int(ignore_index),
                               hw=hw, tile_hw=tile_hw)

    cost = pl.CostEstimate(
        flops=8 * n * c * hw,
        transcendentals=n * hw * (c + 1),
        bytes_accessed=(x.size * x.dtype.itemsize + t.size * 4 + c * 4
                        + 2 * n * n_tiles * 128 * 4),
    )

    out_sum, out_cnt = pl.pallas_call(
        kernel,
        out_shape=(jax.ShapeDtypeStruct((n, n_tiles, 1, 128), jnp.float32),
                   jax.ShapeDtypeStruct((n, n_tiles, 1, 128), jnp.float32)),
        grid_spec=pltpu.PrefetchScalarGridSpec(
            num_scalar_prefetch=0,
            grid=(n, n_tiles),
            in_specs=[
                # logits: classes on sublanes (full class dim), pixels on lanes
                pl.BlockSpec((None, c, tile_hw), lambda i, j: (i, 0, j)),
                # targets: lane-dense (1, tile_hw) block
                pl.BlockSpec((None, 1, tile_hw), lambda i, j: (i, 0, j)),
                # log(class counts): tiny constant-index block
                pl.BlockSpec((c, 1), lambda i, j: (0, 0)),
            ],
            out_specs=[
                # independent per-(batch, tile) folded partials
                pl.BlockSpec((None, None, 1, 128), lambda i, j: (i, j, 0, 0)),
                pl.BlockSpec((None, None, 1, 128), lambda i, j: (i, j, 0, 0)),
            ],
        ),
        compiler_params=pltpu.CompilerParams(
            dimension_semantics=("parallel", "parallel"),
            vmem_limit_bytes=48 * 1024 * 1024),
        cost_estimate=cost,
    )(x, t, logw)

    total = jnp.sum(out_sum)
    count = jnp.sum(out_cnt)
    return total / jnp.maximum(count, 1.0)


def _reference(pred_nchw, targets, cls_num_list=GTAV_CLS_NUM_LIST,
               ignore_index=-100):
    logw = jnp.log(jnp.asarray(cls_num_list, dtype=jnp.float32))
    x = pred_nchw.astype(jnp.float32) + logw.reshape(1, -1, 1, 1)
    x = jnp.transpose(x, (0, 2, 3, 1)).reshape(-1, x.shape[1])
    t = targets.reshape(-1)
    lse = jax.scipy.special.logsumexp(x, axis=1)
    picked = jnp.take_along_axis(
        x, jnp.clip(t, 0, x.shape[1] - 1)[:, None], axis=1)[:, 0]
    valid = (t != ignore_index).astype(jnp.float32)
    return jnp.sum((lse - picked) * valid) / jnp.maximum(jnp.sum(valid), 1.0)


if __name__ == "__main__":
    key = jax.random.PRNGKey(0)
    k1, k2, k3, k4 = jax.random.split(key, 4)

    # Case 1: tile-aligned spatial size (HW = 256), single tile.
    N, C, H, W = 2, NUM_CLASSES, 16, 16
    pred = jax.random.normal(k1, (N, C, H, W), dtype=jnp.float32)
    targets = jax.random.randint(k2, (N, H, W), 0, C, dtype=jnp.int32)
    targets = targets.at[0, 0, :4].set(-100)          # a few ignored pixels
    loss = jax.block_until_ready(balanced_softmax_ce(pred, targets))
    ref = _reference(pred, targets)
    assert jnp.allclose(loss, ref, rtol=1e-5, atol=1e-5), (loss, ref)

    # Case 2: ragged tail (HW = 180, tile_hw = 128 -> 2 tiles, last one partial),
    # exercising the in-kernel lane masking that replaced jnp.pad.
    N2, H2, W2 = 2, 12, 15
    pred2 = jax.random.normal(k3, (N2, C, H2, W2), dtype=jnp.float32)
    targets2 = jax.random.randint(k4, (N2, H2, W2), 0, C, dtype=jnp.int32)
    targets2 = targets2.at[1, 3, :5].set(-100)
    loss2 = jax.block_until_ready(
        balanced_softmax_ce(pred2, targets2, tile_hw=128))
    ref2 = _reference(pred2, targets2)
    assert jnp.allclose(loss2, ref2, rtol=1e-5, atol=1e-5), (loss2, ref2)

    print("KERNEL_OK")
</pallas_src>

<mosaic_0001>
module attributes {stable_mosaic.version = 11 : i64} {
  func.func @_bsce_kernel(%arg0: i32, %arg1: i32, %arg2: memref<1x19x256xf32, #tpu.memory_space<vmem>>, %arg3: memref<1x1x256xi32, #tpu.memory_space<vmem>>, %arg4: memref<19x1xf32, #tpu.memory_space<vmem>>, %arg5: memref<1x1x1x128xf32, #tpu.memory_space<vmem>>, %arg6: memref<1x1x1x128xf32, #tpu.memory_space<vmem>>) attributes {dimension_semantics = [#tpu.dimension_semantics<parallel>, #tpu.dimension_semantics<parallel>], iteration_bounds = array<i64: 2, 1>, scalar_prefetch = 0 : i64, scratch_operands = 0 : i64, tpu.core_type = #tpu.core_type<tc>, window_params = [{transform_indices = @transform_0, window_bounds = array<i64: 1, 19, 256>}, {transform_indices = @transform_1, window_bounds = array<i64: 1, 1, 256>}, {pipeline_mode = #tpu.pipeline_mode<synchronous>, transform_indices = @transform_2, window_bounds = array<i64: 19, 1>}, {transform_indices = @transform_3, window_bounds = array<i64: 1, 1, 1, 128>}, {transform_indices = @transform_4, window_bounds = array<i64: 1, 1, 1, 128>}]} {
    %c0 = arith.constant 0 : index
    %c0_0 = arith.constant 0 : index
    %c0_1 = arith.constant 0 : index
    %0 = vector.load %arg2[%c0, %c0_0, %c0_1] : memref<1x19x256xf32, #tpu.memory_space<vmem>>, vector<1x19x256xf32>
    %1 = vector.shape_cast %0 : vector<1x19x256xf32> to vector<19x256xf32>
    %c0_2 = arith.constant 0 : index
    %c0_3 = arith.constant 0 : index
    %2 = vector.load %arg4[%c0_2, %c0_3] : memref<19x1xf32, #tpu.memory_space<vmem>>, vector<19x1xf32>
    %3 = vector.broadcast %2 : vector<19x1xf32> to vector<19x256xf32>
    %4 = arith.addf %1, %3 : vector<19x256xf32>
    %cst = arith.constant dense<0xFF800000> : vector<256xf32>
    %5 = vector.multi_reduction <maximumf>, %4, %cst [0] : vector<19x256xf32> to vector<256xf32>
    %6 = vector.shape_cast %5 : vector<256xf32> to vector<1x256xf32>
    %7 = vector.broadcast %6 : vector<1x256xf32> to vector<19x256xf32>
    %8 = arith.subf %4, %7 : vector<19x256xf32>
    %9 = math.exp %8 : vector<19x256xf32>
    %cst_4 = arith.constant dense<0.000000e+00> : vector<256xf32>
    %10 = vector.multi_reduction <add>, %9, %cst_4 [0] : vector<19x256xf32> to vector<256xf32>
    %11 = vector.shape_cast %10 : vector<256xf32> to vector<1x256xf32>
    %12 = math.log %11 : vector<1x256xf32>
    %13 = arith.addf %6, %12 : vector<1x256xf32>
    %c0_5 = arith.constant 0 : index
    %c0_6 = arith.constant 0 : index
    %c0_7 = arith.constant 0 : index
    %14 = vector.load %arg3[%c0_5, %c0_6, %c0_7] : memref<1x1x256xi32, #tpu.memory_space<vmem>>, vector<1x1x256xi32>
    %15 = vector.shape_cast %14 : vector<1x1x256xi32> to vector<1x256xi32>
    %16 = tpu.iota {dimensions = array<i32: 0>} : vector<19x1xi32>
    %17 = vector.broadcast %16 : vector<19x1xi32> to vector<19x256xi32>
    %18 = vector.broadcast %15 : vector<1x256xi32> to vector<19x256xi32>
    %19 = arith.cmpi eq, %17, %18 : vector<19x256xi32>
    %cst_8 = arith.constant 0.000000e+00 : f32
    %20 = vector.broadcast %cst_8 : f32 to vector<19x256xf32>
    %21 = arith.select %19, %4, %20 : vector<19x256xi1>, vector<19x256xf32>
    %cst_9 = arith.constant dense<0.000000e+00> : vector<256xf32>
    %22 = vector.multi_reduction <add>, %21, %cst_9 [0] : vector<19x256xf32> to vector<256xf32>
    %23 = vector.shape_cast %22 : vector<256xf32> to vector<1x256xf32>
    %24 = tpu.iota {dimensions = array<i32: 1>} : vector<1x256xi32>
    %c256_i32 = arith.constant 256 : i32
    %25 = arith.muli %arg1, %c256_i32 : i32
    %26 = vector.broadcast %25 : i32 to vector<1x256xi32>
    %27 = arith.addi %26, %24 : vector<1x256xi32>
    %c256_i32_10 = arith.constant 256 : i32
    %28 = vector.broadcast %c256_i32_10 : i32 to vector<1x256xi32>
    %29 = arith.cmpi slt, %27, %28 : vector<1x256xi32>
    %c-100_i32 = arith.constant -100 : i32
    %30 = vector.broadcast %c-100_i32 : i32 to vector<1x256xi32>
    %31 = arith.cmpi ne, %15, %30 : vector<1x256xi32>
    %32 = arith.andi %31, %29 : vector<1x256xi1>
    %33 = arith.subf %13, %23 : vector<1x256xf32>
    %cst_11 = arith.constant 0.000000e+00 : f32
    %34 = vector.broadcast %cst_11 : f32 to vector<1x256xf32>
    %35 = arith.select %32, %33, %34 : vector<1x256xi1>, vector<1x256xf32>
    %36 = arith.extui %32 : vector<1x256xi1> to vector<1x256xi32>
    %37 = arith.sitofp %36 : vector<1x256xi32> to vector<1x256xf32>
    %38 = vector.extract_strided_slice %35 {offsets = [0, 0], sizes = [1, 128], strides = [1, 1]} : vector<1x256xf32> to vector<1x128xf32>
    %39 = vector.extract_strided_slice %35 {offsets = [0, 128], sizes = [1, 128], strides = [1, 1]} : vector<1x256xf32> to vector<1x128xf32>
    %40 = arith.addf %38, %39 : vector<1x128xf32>
    %c0_12 = arith.constant 0 : index
    %c0_13 = arith.constant 0 : index
    %c0_14 = arith.constant 0 : index
    %c0_15 = arith.constant 0 : index
    %41 = vector.load %arg5[%c0_12, %c0_13, %c0_14, %c0_15] : memref<1x1x1x128xf32, #tpu.memory_space<vmem>>, vector<1x1x1x128xf32>
    %42 = vector.shape_cast %41 : vector<1x1x1x128xf32> to vector<1x128xf32>
    %43 = vector.shape_cast %40 : vector<1x128xf32> to vector<1x1x1x128xf32>
    tpu.vector_store %arg5[%c0_12, %c0_13, %c0_14, %c0_15], %43 {strides = array<i32>} : memref<1x1x1x128xf32, #tpu.memory_space<vmem>>, vector<1x1x1x128xf32>,
    %44 = vector.extract_strided_slice %37 {offsets = [0, 0], sizes = [1, 128], strides = [1, 1]} : vector<1x256xf32> to vector<1x128xf32>
    %45 = vector.extract_strided_slice %37 {offsets = [0, 128], sizes = [1, 128], strides = [1, 1]} : vector<1x256xf32> to vector<1x128xf32>
    %46 = arith.addf %44, %45 : vector<1x128xf32>
    %c0_16 = arith.constant 0 : index
    %c0_17 = arith.constant 0 : index
    %c0_18 = arith.constant 0 : index
    %c0_19 = arith.constant 0 : index
    %47 = vector.load %arg6[%c0_16, %c0_17, %c0_18, %c0_19] : memref<1x1x1x128xf32, #tpu.memory_space<vmem>>, vector<1x1x1x128xf32>
    %48 = vector.shape_cast %47 : vector<1x1x1x128xf32> to vector<1x128xf32>
    %49 = vector.shape_cast %46 : vector<1x128xf32> to vector<1x1x1x128xf32>
    tpu.vector_store %arg6[%c0_16, %c0_17, %c0_18, %c0_19], %49 {strides = array<i32>} : memref<1x1x1x128xf32, #tpu.memory_space<vmem>>, vector<1x1x1x128xf32>,
    return
  }
  func.func @transform_0(%arg0: i32, %arg1: i32) -> (i32, i32, i32) {
    %c0_i32 = arith.constant 0 : i32
    %c0_i32_0 = arith.constant 0 : i32
    return %arg0, %c0_i32, %arg1 : i32, i32, i32
  }
  func.func @transform_1(%arg0: i32, %arg1: i32) -> (i32, i32, i32) {
    %c0_i32 = arith.constant 0 : i32
    %c0_i32_0 = arith.constant 0 : i32
    return %arg0, %c0_i32, %arg1 : i32, i32, i32
  }
  func.func @transform_2(%arg0: i32, %arg1: i32) -> (i32, i32) {
    %c0_i32 = arith.constant 0 : i32
    %c0_i32_0 = arith.constant 0 : i32
    %c0_i32_1 = arith.constant 0 : i32
    return %c0_i32, %c0_i32_0 : i32, i32
  }
  func.func @transform_3(%arg0: i32, %arg1: i32) -> (i32, i32, i32, i32) {
    %c0_i32 = arith.constant 0 : i32
    %c0_i32_0 = arith.constant 0 : i32
    %c0_i32_1 = arith.constant 0 : i32
    return %arg0, %arg1, %c0_i32, %c0_i32_0 : i32, i32, i32, i32
  }
  func.func @transform_4(%arg0: i32, %arg1: i32) -> (i32, i32, i32, i32) {
    %c0_i32 = arith.constant 0 : i32
    %c0_i32_0 = arith.constant 0 : i32
    %c0_i32_1 = arith.constant 0 : i32
    return %arg0, %arg1, %c0_i32, %c0_i32_0 : i32, i32, i32, i32
  }
}

</mosaic_0001>

<bundles_post_ra>
// kernel: tpu_custom_call.1
= control target key start
LH: loop header
LB: loop body
LE: loop exit
PB: predicated region body
PF: predicated region fallthrough
CT: control target
= control target key end

     0   :  { %10 = vsyncpa [#allocation3], 0  ;;  %s1047_s0 = inlined_call_operand.vmem [shape: f32[2,19,256], index: 0, kind: input, shape index: {}]   ;;  %s1048_s1 = inlined_call_operand.vmem [shape: s32[2,1,256], index: 1, kind: input, shape index: {}]   ;;  %s1049_s2 = inlined_call_operand.vmem [shape: f32[19,1], index: 2, kind: input, shape index: {}]   ;;  %s1050_s3 = inlined_call_operand.hbm [shape: f32[2,1,1,128], index: 3, kind: output, shape index: {0}]   ;;  %s1051_s4 = inlined_call_operand.hbm [shape: f32[2,1,1,128], index: 4, kind: output, shape index: {1}]  }
   0x1   :  { %12 = vsyncpa [#allocation3 + $0x1], 0 }
   0x2   :  { %13 = vsyncpa [#allocation5], 0 }
   0x3   :  { %15 = vsyncpa [#allocation5 + $0x1], 0  ;;  %s846_s15 = smov 0   ;;  %s848_s16 = smov 0  }
   0x4   :  { %s850_s17 = smov 0   ;;  %s852_s18 = smov 0  }
   0x5   :  { %s854_s19 = smov 0   ;;  %s856_s20 = smov 0  }
   0x6 LB: > { %s612_s21 = sadd.s32 4294967295, %s813_s20   ;;  %s613_s22 = sadd.s32 4294967294, %s813_s20   ;;  %s813_s20 = sphi %s856_s20, %s21_s20   ;;  %s809_s19 = sphi %s854_s19, %s1060_s19   ;;  %s805_s18 = sphi %s852_s18, %s1059_s18   ;;  %s801_s17 = sphi %s850_s17, %s1058_s17   ;;  %s797_s16 = sphi %s848_s16, %s1057_s16   ;;  %s793_s15 = sphi %s846_s15, %s1056_s15  }
   0x7   : > { %s33_s23 = sadd.s32 1, %s809_s19  ;;  %s119_s24 = sadd.s32 1, %s801_s17 }
   0x8   : > { %p35_p0 = scmp.ge.s32.totalorder %s33_s23, 2  ;;  %p129_p1 = scmp.ne.s32.totalorder %s801_s17, %s797_s16 }
   0x9   : > { %p130_p2 = scmp.eq.s32.totalorder %s612_s21, 1  ;;  %p135_p3 = scmp.ne.s32.totalorder %s797_s16, %s793_s15 }
   0xa   : > { %s1062_s23 = smov (%p35_p0, %s33_s23), 0  ;;  %p136_p5 = scmp.eq.s32.totalorder %s613_s22, 1 }
   0xb   : > { %p886_p4 = por %p130_p2, %p129_p1  ;;  %s114_s26 = ssub.s32 %s809_s19, %s1062_s23 }
   0xc   : > { %p616_p6 = scmp.ge.s32.totalorder %s813_s20, 1  ;;  %p117_p7 = scmp.eq.s32.totalorder %s114_s26, 0 }
   0xd   : > { %p893_p8 = por %p136_p5, %p135_p3  ;;  %p210_p9 = scmp.lt.s32.totalorder %s813_s20, 3 }
   0xe   : > { %s899_s28 = scalar_select %p117_p7, %s801_s17, %s119_s24  }
   0xf   : > { %p211_p10 = pnand %p616_p6, %p210_p9 }
  0x10   : > { %p252_p11 = scmp.lt.s32.totalorder (!%p211_p10), %s805_s18, 1  ;;  %s933_s14 = sand.u32 (!%p211_p10), 1, %s797_s16  }
  0x11   : > { %214 = sbr.rel (%p211_p10) target bundleno = 252 (0xfc), region = 32  ;;  %s620_s21 = sshll.u32 (!%p211_p10), %s805_s18, 4 }
  0x12   : > { %s250_s22 = scalar_lea.vmem (!%p211_p10), [#allocation4], %s933_s14  ;;  %s496_s29 = scalar_lea.hbm (!%p211_p10), %s1051_s4, %s620_s21 }
  0x13   : > { %s498_s30 = sshll.u32 (!%p211_p10), %s250_s22, 4  ;;  %s471_s5 = scalar_lea.sflag (!%p211_p10), [#allocation5], %s933_s14  ;;  %s499_s30 = int_to_ptr.vmem [resolvable:$true] %s498_s30 }
  0x14   : > { %s707_s6 = scalar_lea.vmem (!%p211_p10), %s499_s30, 16  ;;  %s819_s7 = smov (!%p211_p10), [#allocation4]  }
  0x15   : > { %p708_p12 = scmp.ne.s32.totalorder (!%p211_p10), %s499_s30, %s707_s6  ;;  %s711_s8 = sshll.u32 (!%p211_p10), %s819_s7, 4  ;;  %s712_s8 = int_to_ptr.vmem [resolvable:$false] %s711_s8 }
  0x16   : > { %v278_v0 = vld [vmem:[%s1049_s2 + $0x10] sm:$0x7]  ;;  %v277_v1 = vld [vmem:[%s1049_s2 + $0x8] sm:$0xff]  ;;  %v815_v2 = vmov 0   ;;  %v276_v3 = vld [vmem:[%s1049_s2] sm:$0xff]  ;;  %s912_s9 = scalar_select %p252_p11, %s805_s18, 1  ;;  %v362_v4 = vlaneseq }
  0x17   : > { %689 = vset.pattern.permute.xlu0 %v815_v2  ;;  %690 = vset.pattern.permute.xlu1 %v815_v2  ;;  %v816_v5 = vmov 1966171168   ;;  %v817_v8 = vmov 1   ;;  %v818_v16 = vmov 0.0   ;;  %p709_p13 = pnand %p708_p12, %p886_p4  ;;  %p714_p1 = scmp.lt.s32.totalorder %s499_s30, %s712_s8 }
  0x18   : > { %291 = vperm.xlu0 %689, %v278_v0   ;;  %286 = vperm.xlu1 %690, %v277_v1   ;;  %v418_v6 = vunpack.c.l.s4 %v816_v5  ;;  %s618_s10 = sshll.u32 %s912_s9, 1  ;;  %v915_v7 = vshrl.u32 %v362_v4, 7  ;;  %v416_v9 = vcombine.low %v817_v8, %v817_v8 }
  0x19   : > { %s268_s13 = scalar_lea.vmem %s1048_s1, %s618_s10  ;;  %p710_p0 = pneg %p709_p13 }
  0x1a   : > { %v419_v10 = vunpack.c.0.s8 %v418_v6  ;;  %v924_v13 = vld [vmem:[%s268_s13] sm:$0x3]  ;;  %s713_s10 = scalar_lea.vmem %s712_s8, 32 }
  0x1b   : > { %vm413_vm0 = vcmp.ne.s32.totalorder %v924_v13, 4294967196  ;;  %p715_p2 = scmp.lt.s32.totalorder %s713_s10, %s707_s6 }
  0x1c   : > { %281 = vperm.xlu0 %689, %v276_v3   ;;  %v921_v11 = vsub.s32 %v419_v10, %v915_v7 }
  0x1d   : > { %p716_p3 = por %p715_p2, %p714_p1 }
  0x1e   : > { %v423_v12 = vrot.slane %v416_v9, %v921_v11 }
  0x1f   : > { %p717_p5 = pnand %p716_p3, %p710_p0 }
  0x20   : > { %v430_v14 = vrot.slane %v423_v12, %v921_v11 }
  0x22   : > { %vm431_vm1 = vcmp.ne.s32.totalorder %v430_v14, 0 }
  0x23   : > { %vm928_vm2 = vmand %vm413_vm0, %vm431_vm1 }
  0x24   : > { %v619_v17 = vsel %vm928_vm2, 1.0, %v818_v16 }
  0x25   : > { %v462_v18 = vrot.slane %v619_v17, 1 }
  0x27   : > { %v464_v19 = vadd.f32 %v619_v17, %v462_v18 }
  0x29   : > { %465 = vst [vmem:[%s250_s22] sm:$0x1] %v464_v19 }
  0x2a   : > { %720 = shalt.err (!%p717_p5)
}
  0x2b   : > { %s721_s11 = scalar_lea.hbm %s496_s29, 16  ;;  %s725_s22 = scalar_lea.hbm %s1051_s4, 32 }
  0x2c   : > { %p722_p6 = scmp.ne.s32.totalorder %s496_s29, %s721_s11  ;;  %p726_p10 = scmp.lt.s32.totalorder %s496_s29, %s1051_s4 }
  0x2d   : > { %p727_p11 = scmp.lt.s32.totalorder %s725_s22, %s721_s11 }
  0x2e   : > { %p723_p7 = pnand %p722_p6, %p886_p4 }
  0x2f   : > { %p728_p12 = por %p727_p11, %p726_p10 }
  0x30   : > { %p724_p9 = pneg %p723_p7 }
  0x32   : > { %p729_p13 = pnand %p728_p12, %p724_p9 }
  0x34   : > { %732 = shalt.err (!%p729_p13)
}
  0x35   : > { %626 = dma.vmem_to_hbm [thread:$0]  (%p886_p4), %s499_s30, 16, %s496_s29, %s471_s5   ;;  %vm300_vm3 = vcmask 1042432   ;;  %v368_v1 = vsub.s32 0, %v915_v7  ;;  %v372_v2 = vsub.s32 1, %v915_v7  ;;  %v364_v3 = vadd.s32 8, %v915_v7 }
  0x36   : > { %s624_s6 = smul.u32 48, %s912_s9  ;;  %v365_v5 = vadd.s32 16, %v915_v7  ;;  %s244_s9 = scalar_lea.vmem [#allocation2], %s933_s14 }
  0x37   : > { %v369_v6 = vrot.slane %v924_v13, %v368_v1  ;;  %v373_v9 = vrot.slane %v924_v13, %v372_v2  ;;  %s484_s29 = sshll.u32 %s244_s9, 4  ;;  %s482_s11 = scalar_lea.hbm %s1050_s3, %s620_s21  ;;  %s485_s29 = int_to_ptr.vmem [resolvable:$true] %s484_s29 }
  0x38   : > { %s259_s10 = scalar_lea.vmem %s1047_s0, %s624_s6  ;;  %s467_s12 = scalar_lea.sflag [#allocation3], %s933_s14 }
  0x39   : > { %v274_v20 = vld [vmem:[%s259_s10 + $0x20] sm:$0x7]  ;;  %v275_v21 = vld [vmem:[%s259_s10 + $0x28] sm:$0x7]  ;;  %v272_v28 = vld [vmem:[%s259_s10 + $0x10] sm:$0xff]  ;;  %vm376_vm4 = vcmp.eq.s32.totalorder %v364_v3, %v369_v6  ;;  %vm374_vm5 = vcmp.eq.s32.totalorder %v915_v7, %v369_v6  ;;  %vm377_vm6 = vcmp.eq.s32.totalorder %v364_v3, %v373_v9  ;;  %vm375_vm7 = vcmp.eq.s32.totalorder %v915_v7, %v373_v9  ;;  %s733_s13 = scalar_lea.vmem %s485_s29, 16 }
  0x3a   : > { %v270_v25 = vld [vmem:[%s259_s10] sm:$0xff]  ;;  %v271_v26 = vld [vmem:[%s259_s10 + $0x8] sm:$0xff]  ;;  %v273_v29 = vld [vmem:[%s259_s10 + $0x18] sm:$0xff]  ;;  %vm378_vm8 = vcmp.eq.s32.totalorder %v365_v5, %v369_v6  ;;  %vm379_vm9 = vcmp.eq.s32.totalorder %v365_v5, %v373_v9  ;;  %p734_p0 = scmp.ne.s32.totalorder %s485_s29, %s733_s13  ;;  %s820_s22 = smov [#allocation2]  }
  0x3b   : > { %s737_s24 = sshll.u32 %s820_s22, 4  ;;  %s738_s24 = int_to_ptr.vmem [resolvable:$false] %s737_s24 }
  0x3c   : > { %p735_p1 = pnand %p734_p0, %p886_p4  ;;  %s739_s26 = scalar_lea.vmem %s738_s24, 32 }
  0x3d   : > { %p740_p3 = scmp.lt.s32.totalorder %s485_s29, %s738_s24  ;;  %p741_p5 = scmp.lt.s32.totalorder %s739_s26, %s733_s13 }
  0x3e   : > { %p736_p2 = pneg %p735_p1 }
  0x3f   : > { %p742_p6 = por %p741_p5, %p740_p3 }
  0x41   : > { %p743_p7 = pnand %p742_p6, %p736_p2 }
  0x93   : > { %v292_v22 = vpop.permute.xlu0 %291  ;;  %v287_v27 = vpop.permute.xlu1 %286 }
  0x94   : > { %v961_v23 = vadd.f32 %v292_v22, %v274_v20  ;;  %v963_v24 = vadd.f32 %v292_v22, %v275_v21  ;;  %v296_v35 = vadd.f32 %v287_v27, %v272_v28  ;;  %v297_v36 = vadd.f32 %v287_v27, %v273_v29 }
  0x96   : > { %v301_v33 = vsel %vm300_vm3, %v961_v23, -inf  ;;  %v310_v34 = vsel %vm300_vm3, %v963_v24, -inf  ;;  %v382_v19 = vsel %vm376_vm4, %v296_v35, 0.0  ;;  %v383_v22 = vsel %vm377_vm6, %v297_v36, 0.0 }
  0x97   : > { %v282_v30 = vpop.permute.xlu0 %281  ;;  %v384_v28 = vsel %vm378_vm8, %v961_v23, 0.0 }
  0x98   : > { %v294_v31 = vadd.f32 %v282_v30, %v270_v25  ;;  %v965_v32 = vadd.f32 %v282_v30, %v271_v26  ;;  %v385_v30 = vsel %vm379_vm9, %v963_v24, 0.0 }
  0x9a   : > { %v302_v37 = vmax.f32 %v294_v31, %v301_v33  ;;  %v311_v38 = vmax.f32 %v965_v32, %v310_v34  ;;  %v380_v21 = vsel %vm374_vm5, %v294_v31, 0.0  ;;  %v381_v26 = vsel %vm375_vm7, %v965_v32, 0.0 }
  0x9b   : > { %v386_v7 = vadd.f32 %v382_v19, %v380_v21  ;;  %v395_v34 = vadd.f32 %v383_v22, %v381_v26 }
  0x9c   : > { %v303_v39 = vmax.f32 %v302_v37, %v296_v35  ;;  %v312_v40 = vmax.f32 %v311_v38, %v297_v36 }
  0x9e   : > { %v304_v41 = vrot.slane %v303_v39, 4  ;;  %v313_v42 = vrot.slane %v312_v40, 4 }
  0xa0   : > { %v305_v43 = vmax.f32 %v303_v39, %v304_v41  ;;  %v314_v44 = vmax.f32 %v312_v40, %v313_v42 }
  0xa2   : > { %v306_v45 = vrot.slane %v305_v43, 2  ;;  %v315_v46 = vrot.slane %v314_v44, 2 }
  0xa4   : > { %v307_v47 = vmax.f32 %v305_v43, %v306_v45  ;;  %v316_v48 = vmax.f32 %v314_v44, %v315_v46 }
  0xa6   : > { %v308_v49 = vrot.slane %v307_v47, 1  ;;  %v317_v50 = vrot.slane %v316_v48, 1 }
  0xa8   : > { %v972_v51 = vmax.f32 %v307_v47, %v308_v49  ;;  %v974_v52 = vmax.f32 %v316_v48, %v317_v50 }
  0xaa   : > { %v319_v53 = vsub.f32 %v294_v31, %v972_v51  ;;  %v320_v54 = vsub.f32 %v965_v32, %v974_v52  ;;  %v321_v55 = vsub.f32 %v296_v35, %v972_v51  ;;  %v322_v56 = vsub.f32 %v297_v36, %v974_v52 }
  0xab   : > { %v323_v57 = vsub.f32 %v961_v23, %v972_v51  ;;  %v324_v58 = vsub.f32 %v963_v24, %v974_v52  ;;  %v387_v35 = vsel %vm300_vm3, %v384_v28, 0.0  ;;  %v396_v31 = vsel %vm300_vm3, %v385_v30, 0.0 }
  0xac   : > { %v325_v59 = vmul.f32 1.442695, %v319_v53  ;;  %v327_v60 = vmul.f32 1.442695, %v320_v54  ;;  %v329_v61 = vmul.f32 1.442695, %v321_v55  ;;  %v388_v39 = vadd.f32 %v387_v35, %v386_v7 }
  0xad   : > { %v331_v62 = vmul.f32 1.442695, %v322_v56  ;;  %v333_v63 = vmul.f32 1.442695, %v323_v57  ;;  %v335_v0 = vmul.f32 1.442695, %v324_v58  ;;  %v397_v41 = vadd.f32 %v396_v31, %v395_v34 }
  0xae   : > { %691 = vpow2.f32 %v325_v59  ;;  %v389_v43 = vrot.slane %v388_v39, 4 }
  0xaf   : > { %693 = vpow2.f32 %v327_v60  ;;  %v398_v44 = vrot.slane %v397_v41, 4 }
  0xb0   : > { %695 = vpow2.f32 %v329_v61  ;;  %v390_v47 = vadd.f32 %v389_v43, %v388_v39 }
  0xb1   : > { %697 = vpow2.f32 %v331_v62  ;;  %v399_v48 = vadd.f32 %v398_v44, %v397_v41 }
  0xb2   : > { %699 = vpow2.f32 %v333_v63  ;;  %v391_v49 = vrot.slane %v390_v47, 2 }
  0xb3   : > { %701 = vpow2.f32 %v335_v0  ;;  %v400_v50 = vrot.slane %v399_v48, 2 }
  0xb4   : > { %v392_v53 = vadd.f32 %v391_v49, %v390_v47 }
  0xb5   : > { %v401_v54 = vadd.f32 %v400_v50, %v399_v48 }
  0xb6   : > { %v393_v55 = vrot.slane %v392_v53, 1 }
  0xb7   : > { %v402_v57 = vrot.slane %v401_v54, 1 }
  0xb8   : > { %v394_v61 = vadd.f32 %v393_v55, %v392_v53 }
  0xb9   : > { %v403_v63 = vadd.f32 %v402_v57, %v401_v54 }
  0xbb   : > { %v692_v4 = vpop.eup %691 }
  0xbc   : > { %v694_v8 = vpop.eup %693 }
  0xbd   : > { %v696_v10 = vpop.eup %695 }
  0xbe   : > { %v698_v12 = vpop.eup %697  ;;  %v337_v14 = vadd.f32 %v696_v10, %v692_v4 }
  0xbf   : > { %v700_v16 = vpop.eup %699  ;;  %v346_v17 = vadd.f32 %v698_v12, %v694_v8 }
  0xc0   : > { %v702_v18 = vpop.eup %701  ;;  %v338_v20 = vsel %vm300_vm3, %v700_v16, 0.0 }
  0xc1   : > { %v339_v13 = vadd.f32 %v338_v20, %v337_v14  ;;  %v347_v25 = vsel %vm300_vm3, %v702_v18, 0.0 }
  0xc2   : > { %v348_v27 = vadd.f32 %v347_v25, %v346_v17 }
  0xc3   : > { %v340_v29 = vrot.slane %v339_v13, 4 }
  0xc4   : > { %v349_v33 = vrot.slane %v348_v27, 4 }
  0xc5   : > { %v341_v37 = vadd.f32 %v340_v29, %v339_v13 }
  0xc6   : > { %v350_v38 = vadd.f32 %v349_v33, %v348_v27 }
  0xc7   : > { %v342_v36 = vrot.slane %v341_v37, 2 }
  0xc8   : > { %v351_v40 = vrot.slane %v350_v38, 2 }
  0xc9   : > { %v343_v32 = vadd.f32 %v342_v36, %v341_v37 }
  0xca   : > { %v352_v42 = vadd.f32 %v351_v40, %v350_v38 }
  0xcb   : > { %v344_v23 = vrot.slane %v343_v32, 1 }
  0xcc   : > { %v353_v45 = vrot.slane %v352_v42, 1 }
  0xcd   : > { %v345_v46 = vadd.f32 %v344_v23, %v343_v32 }
  0xce   : > { %v354_v24 = vadd.f32 %v353_v45, %v352_v42 }
  0xcf   : > { %703 = vlog2.f32 %v345_v46 }
  0xd0   : > { %705 = vlog2.f32 %v354_v24 }
  0xdc   : > { %v704_v56 = vpop.eup %703 }
  0xdd   : > { %v706_v58 = vpop.eup %705  ;;  %v356_v59 = vmul.f32 0.6931472, %v704_v56 }
  0xde   : > { %v358_v60 = vmul.f32 0.6931472, %v706_v58 }
  0xdf   : > { %v359_v62 = vadd.f32 %v356_v59, %v972_v51 }
  0xe0   : > { %v360_v0 = vadd.f32 %v358_v60, %v974_v52 }
  0xe1   : > { %v433_v1 = vsub.f32 %v359_v62, %v394_v61 }
  0xe2   : > { %v434_v2 = vsub.f32 %v360_v0, %v403_v63 }
  0xe4   : > { %v437_v3 = vcombine.low %v433_v1, %v434_v2 }
  0xe6   : > { %v444_v4 = vrot.slane %v437_v3, %v921_v11 }
  0xe8   : > { %v451_v5 = vrot.slane %v444_v4, %v921_v11 }
  0xea   : > { %v453_v6 = vsel %vm928_vm2, %v451_v5, 0.0 }
  0xeb   : > { %v457_v8 = vrot.slane %v453_v6, 1 }
  0xed   : > { %v459_v9 = vadd.f32 %v457_v8, %v453_v6 }
  0xef   : > { %460 = vst [vmem:[%s244_s9] sm:$0x1] %v459_v9 }
  0xf0   : > { %746 = shalt.err (!%p743_p7)
}
  0xf1   : > { %s747_s18 = scalar_lea.hbm %s482_s11, 16  ;;  %s751_s6 = scalar_lea.hbm %s1050_s3, 32 }
  0xf2   : > { %p748_p9 = scmp.ne.s32.totalorder %s482_s11, %s747_s18  ;;  %p752_p12 = scmp.lt.s32.totalorder %s482_s11, %s1050_s3 }
  0xf3   : > { %p753_p13 = scmp.lt.s32.totalorder %s751_s6, %s747_s18 }
  0xf4   : > { %p749_p10 = pnand %p748_p9, %p886_p4 }
  0xf5   : > { %p754_p0 = por %p753_p13, %p752_p12 }
  0xf6   : > { %p750_p11 = pneg %p749_p10 }
  0xf8   : > { %p755_p1 = pnand %p754_p0, %p750_p11 }
  0xfa   : > { %758 = shalt.err (!%p755_p1)
}
  0xfb   : > { %625 = dma.vmem_to_hbm [thread:$0]  (%p886_p4), %s485_s29, 16, %s482_s11, %s467_s12  }
  0xfc PF: > { %p636_p2 = scmp.ge.s32.totalorder %s813_s20, 2  ;;  %s510_s10 = sand.u32 1, %s793_s15  }
  0xfd   : > { %s511_s9 = scalar_lea.sflag [#allocation3], %s510_s10 }
  0xfe   : > { %p630_p3 = pnand %p636_p2, %p893_p8 }
 0x100   : > { %p631_p5 = pneg %p630_p3 }
 0x102   : > { %784 = dma.done.wait (%p631_p5), %s511_s9, 16  }
 0x103   : > { %786 = vsyncadd (%p631_p5), %s511_s9, 4294967280  ;;  %s519_s30 = scalar_lea.sflag [#allocation5], %s510_s10 }
 0x104   : > { %788 = dma.done.wait (%p631_p5), %s519_s30, 16  }
 0x105   : > { %790 = vsyncadd (%p631_p5), %s519_s30, 4294967280  ;;  %s21_s20 = sadd.s32 1, %s813_s20   ;;  %s1056_s15 = smov %s797_s16 }
 0x106   : > { %p18_p6 = scmp.ge.s32.totalorder %s21_s20, 4   ;;  %s1057_s16 = smov %s801_s17 }
 0x107   : > { %s1058_s17 = smov %s899_s28  ;;  %s1059_s18 = smov %s809_s19 }
 0x108   : > { %s1060_s19 = smov %s1062_s23  ;;  %20 = sbr.rel (!%p18_p6) target bundleno = 6 (0x6), region = 87 }
 0x10d   :  { %523 = vsyncpa [#allocation3], 1 }
 0x10e   :  { %525 = vsyncpa [#allocation3 + $0x1], 1 }
 0x10f   :  { %526 = vsyncpa [#allocation5], 1 }
 0x110   :  { %528 = vsyncpa [#allocation5 + $0x1], 1 }

</bundles_post_ra>
